<compile_context>
chip_gen: v7x
topology: tpu7x:2x2x1
jax: 0.10.0
libtpu: 0.0.40
codegen_flags: <defaults>
</compile_context>

<pallas_src>
import functools

import jax
import jax.numpy as jnp
from jax.experimental import pallas as pl
from jax.experimental.pallas import tpu as pltpu

_D = 30                 # B*5 + 20 with B = 2
_LANE_TILE_CAP = 4096   # cells per grid step (multiple of 1024)


def _round_up(x, m):
    return (x + m - 1) // m * m


def _yolo_loss_kernel(p_ref, t_ref, o_ref, *, S, c_coord, c_contain,
                      c_noobj, c_class):
    """One grid step over a (30, K, 128) channel-major tile of cells."""
    f32 = jnp.float32
    S_f = jnp.float32(S)

    def pch(c):           # dense (K, 128) slice of predicted channel c
        return p_ref[c].astype(f32)

    def tch(c):           # dense (K, 128) slice of target channel c
        return t_ref[c].astype(f32)

    t_conf = tch(4)
    obj = t_conf > 0.0          # cells containing an object
    noobj = t_conf == 0.0       # cells without an object (incl. zero padding)

    # ---- no-object loss: confidence channels 4 and 9 of no-object cells ----
    noobj_term = (pch(4) - t_conf) ** 2 + (pch(9) - tch(9)) ** 2

    # ---- class loss: channels 10..29 of object cells (VALU-only reduce) ----
    class_term = jnp.zeros_like(t_conf)
    for c in range(10, 30):
        d = pch(c) - tch(c)
        class_term = class_term + d * d

    # ---- target box geometry: shared by both predicted boxes (hoisted) ----
    t_cx = tch(0) / S_f
    t_cy = tch(1) / S_f
    tw = tch(2)
    th = tch(3)
    t_x1 = t_cx - 0.5 * tw
    t_x2 = t_cx + 0.5 * tw
    t_y1 = t_cy - 0.5 * th
    t_y2 = t_cy + 0.5 * th
    area_t = (t_x2 - t_x1) * (t_y2 - t_y1)

    def iou_box(b):
        # IoU of predicted box `b` against target box 0, per cell (exact div).
        p_cx = pch(5 * b + 0) / S_f
        p_cy = pch(5 * b + 1) / S_f
        pw = pch(5 * b + 2)
        ph = pch(5 * b + 3)
        p_x1 = p_cx - 0.5 * pw
        p_x2 = p_cx + 0.5 * pw
        p_y1 = p_cy - 0.5 * ph
        p_y2 = p_cy + 0.5 * ph
        iw = jnp.maximum(jnp.minimum(p_x2, t_x2) - jnp.maximum(p_x1, t_x1), 0.0)
        ih = jnp.maximum(jnp.minimum(p_y2, t_y2) - jnp.maximum(p_y1, t_y1), 0.0)
        inter = iw * ih
        area_p = (p_x2 - p_x1) * (p_y2 - p_y1)
        # No epsilon (parity with the PyTorch reference); NaN on degenerate
        # all-zero padded cells is masked out by the obj select below.
        return inter / (area_p + area_t - inter)

    # ---- responsible-box selection (find_best_iou_boxes) ----
    iou0 = iou_box(0)
    iou1 = iou_box(1)
    best = iou1 > iou0                       # ties -> box 0 (first index)
    max_iou = jnp.where(best, iou1, iou0)

    def sel_p(c):
        return jnp.where(best, pch(5 + c), pch(c))

    def sel_t(c):
        return jnp.where(best, tch(5 + c), tch(c))

    # ---- containment loss: (responsible pred confidence - max IoU)^2 ----
    contain_term = (sel_p(4) - max_iou) ** 2

    # ---- regression loss: xy (direct) + wh (sqrt), object cells only ----
    xy_term = (sel_p(0) - sel_t(0)) ** 2 + (sel_p(1) - sel_t(1)) ** 2
    zero = jnp.zeros_like(t_conf)
    wh_term = zero
    for c in (2, 3):  # mask BEFORE sqrt (avoid NaN for non-object cells)
        pw_m = jnp.where(obj, sel_p(c), zero)
        tw_m = jnp.where(obj, sel_t(c), zero)
        wh_term = wh_term + (jnp.sqrt(pw_m) - jnp.sqrt(tw_m)) ** 2

    # ---- fused per-cell loss (l_coord, l_noobj, 1/N folded as constants) ----
    per_cell = (c_noobj * jnp.where(noobj, noobj_term, zero)
                + jnp.where(obj,
                            c_class * class_term
                            + c_contain * contain_term
                            + c_coord * xy_term,
                            zero)
                + c_coord * wh_term)

    # One cross-lane/sublane reduction per grid step; splat the partial sum
    # into this program's own (lane-dense) output tile.
    o_ref[...] = jnp.zeros_like(o_ref) + jnp.sum(per_cell)


def yolo_loss_pallas(pred, target, S, B, l_coord, l_noobj):
    """pred, target: (N, S, S, B*5+20) arrays. Returns scalar f32 loss."""
    assert B == 2, "kernel hard-codes B=2 box predictors (as in the reference)"
    N = pred.shape[0]
    D = pred.shape[-1]
    assert D == B * 5 + 20 == _D
    cells = N * S * S

    # Tile the flattened cell axis in multiples of 1024 (so the (K, 128) block
    # dims satisfy the (8, 128) rule), capped at _LANE_TILE_CAP cells/step.
    blocks_1k = _round_up(cells, 1024) // 1024
    tile_blocks = min(blocks_1k, _LANE_TILE_CAP // 1024)
    grid_n = (blocks_1k + tile_blocks - 1) // tile_blocks
    lane_tile = tile_blocks * 1024
    padded = grid_n * lane_tile
    K = lane_tile // 128

    def to_channel_major(x):
        # (N,S,S,D) -> (D, padded//128, 128): channels major; cells split into
        # (sublane-group, lane) so every per-channel slice is a dense tile.
        # Zero padding => padded cells read as "no object" and contribute 0.
        # TODO(synk): have the upstream producer emit this layout directly to
        #             remove this extra HBM pass.
        x2 = x.reshape(cells, D)
        if padded != cells:
            x2 = jnp.pad(x2, ((0, padded - cells), (0, 0)))
        return x2.reshape(padded // 128, 128, D).transpose(2, 0, 1)

    p_t = to_channel_major(pred)
    t_t = to_channel_major(target)

    inv_n = 1.0 / float(N)
    kernel = functools.partial(
        _yolo_loss_kernel,
        S=float(S),
        c_coord=float(l_coord) * inv_n,
        c_contain=inv_n,
        c_noobj=float(l_noobj) * inv_n,
        c_class=inv_n)

    itemsize = jnp.dtype(pred.dtype).itemsize
    cost = pl.CostEstimate(
        flops=170 * padded,
        transcendentals=8 * padded,
        bytes_accessed=2 * padded * D * itemsize + grid_n * 8 * 128 * 4)

    partials = pl.pallas_call(
        kernel,
        out_shape=jax.ShapeDtypeStruct((grid_n, 8, 128), jnp.float32),
        grid=(grid_n,),
        in_specs=[
            pl.BlockSpec((D, K, 128), lambda i: (0, i, 0)),
            pl.BlockSpec((D, K, 128), lambda i: (0, i, 0)),
        ],
        out_specs=pl.BlockSpec((1, 8, 128), lambda i: (i, 0, 0)),
        compiler_params=pltpu.CompilerParams(
            dimension_semantics=("parallel",)),
        cost_estimate=cost,
    )(p_t, t_t)

    # Each program wrote its partial sum into every element of its own tile;
    # pick one per program and reduce outside the kernel.
    return jnp.sum(partials[:, 0, 0])


# ----------------------------------------------------------------------------
# Plain-JAX reference (same masked-reduction math, exact division).
# ----------------------------------------------------------------------------
def _iou_vs_target_ref(p, t, b, S):
    S_f = jnp.float32(S)
    px = p[:, 5 * b + 0:5 * b + 1]
    py = p[:, 5 * b + 1:5 * b + 2]
    pw = p[:, 5 * b + 2:5 * b + 3]
    ph = p[:, 5 * b + 3:5 * b + 4]
    tx, ty, tw, th = t[:, 0:1], t[:, 1:2], t[:, 2:3], t[:, 3:4]

    p_x1 = px / S_f - 0.5 * pw
    p_y1 = py / S_f - 0.5 * ph
    p_x2 = px / S_f + 0.5 * pw
    p_y2 = py / S_f + 0.5 * ph
    t_x1 = tx / S_f - 0.5 * tw
    t_y1 = ty / S_f - 0.5 * th
    t_x2 = tx / S_f + 0.5 * tw
    t_y2 = ty / S_f + 0.5 * th

    iw = jnp.maximum(jnp.minimum(p_x2, t_x2) - jnp.maximum(p_x1, t_x1), 0.0)
    ih = jnp.maximum(jnp.minimum(p_y2, t_y2) - jnp.maximum(p_y1, t_y1), 0.0)
    inter = iw * ih
    area_p = (p_x2 - p_x1) * (p_y2 - p_y1)
    area_t = (t_x2 - t_x1) * (t_y2 - t_y1)
    return inter / (area_p + area_t - inter)


def yolo_loss_reference(pred, target, S, l_coord, l_noobj):
    N = pred.shape[0]
    p = pred.reshape(N * S * S, 30).astype(jnp.float32)
    t = target.reshape(N * S * S, 30).astype(jnp.float32)
    obj = t[:, 4:5] > 0.0
    noobj = t[:, 4:5] == 0.0

    loss_no_object = jnp.sum(jnp.where(
        noobj, (p[:, 4:5] - t[:, 4:5]) ** 2 + (p[:, 9:10] - t[:, 9:10]) ** 2, 0.0))
    class_loss = jnp.sum(jnp.where(obj, (p[:, 10:30] - t[:, 10:30]) ** 2, 0.0))

    iou0 = _iou_vs_target_ref(p, t, 0, S)
    iou1 = _iou_vs_target_ref(p, t, 1, S)
    best = iou1 > iou0
    max_iou = jnp.where(best, iou1, iou0)
    p_sel = jnp.where(best, p[:, 5:10], p[:, 0:5])
    t_sel = jnp.where(best, t[:, 5:10], t[:, 0:5])

    contain_loss = jnp.sum(jnp.where(obj, (p_sel[:, 4:5] - max_iou) ** 2, 0.0))
    xy_sq = (p_sel[:, 0:2] - t_sel[:, 0:2]) ** 2
    wh_p = jnp.where(obj, p_sel[:, 2:4], 0.0)
    wh_t = jnp.where(obj, t_sel[:, 2:4], 0.0)
    wh_sq = (jnp.sqrt(wh_p) - jnp.sqrt(wh_t)) ** 2
    reg_loss = jnp.sum(jnp.where(obj, xy_sq, 0.0)) + jnp.sum(wh_sq)

    total = (l_coord * reg_loss + contain_loss +
             l_noobj * loss_no_object + class_loss)
    return total / N


if __name__ == "__main__":
    # Module "parameters" (YoloLoss.__init__ args) — set deterministically.
    S, B = 7, 2
    l_coord, l_noobj = 5.0, 0.5
    N = 2  # batch

    key = jax.random.PRNGKey(0)
    k_pred, k_tgt, k_obj = jax.random.split(key, 3)

    # Predictions in (0, 1): positive w/h so sqrt in the regression loss is valid.
    pred = jax.random.uniform(k_pred, (N, S, S, B * 5 + 20), jnp.float32,
                              minval=0.05, maxval=1.0)

    # Targets: positive box coords / class scores, binary confidence channels.
    target = jax.random.uniform(k_tgt, (N, S, S, B * 5 + 20), jnp.float32,
                                minval=0.05, maxval=1.0)
    obj_mask = (jax.random.uniform(k_obj, (N, S, S)) < 0.3).astype(jnp.float32)
    target = target.at[..., 4].set(obj_mask)
    target = target.at[..., 9].set(obj_mask)

    loss = yolo_loss_pallas(pred, target, S, B, l_coord, l_noobj)
    jax.block_until_ready(loss)

    ref = yolo_loss_reference(pred, target, S, l_coord, l_noobj)
    assert jnp.isfinite(loss), "loss is not finite"
    # Exact divides in the kernel -> only summation-order differences remain.
    assert jnp.allclose(loss, ref, rtol=1e-4, atol=1e-4), (loss, ref)

    print("KERNEL_OK")
</pallas_src>

<mosaic_0001>
module attributes {stable_mosaic.version = 11 : i64} {
  func.func @_yolo_loss_kernel(%arg0: i32, %arg1: memref<30x8x128xf32, #tpu.memory_space<vmem>>, %arg2: memref<30x8x128xf32, #tpu.memory_space<vmem>>, %arg3: memref<1x8x128xf32, #tpu.memory_space<vmem>>) attributes {dimension_semantics = [#tpu.dimension_semantics<parallel>], iteration_bounds = array<i64: 1>, scalar_prefetch = 0 : i64, scratch_operands = 0 : i64, tpu.core_type = #tpu.core_type<tc>, window_params = [{transform_indices = @transform_0, window_bounds = array<i64: 30, 8, 128>}, {transform_indices = @transform_1, window_bounds = array<i64: 30, 8, 128>}, {transform_indices = @transform_2, window_bounds = array<i64: 1, 8, 128>}]} {
    %c4 = arith.constant 4 : index
    %c0 = arith.constant 0 : index
    %c0_0 = arith.constant 0 : index
    %0 = vector.load %arg2[%c4, %c0, %c0_0] : memref<30x8x128xf32, #tpu.memory_space<vmem>>, vector<1x8x128xf32>
    %1 = vector.shape_cast %0 : vector<1x8x128xf32> to vector<8x128xf32>
    %cst = arith.constant 0.000000e+00 : f32
    %2 = vector.broadcast %cst : f32 to vector<8x128xf32>
    %3 = arith.cmpf ogt, %1, %2 : vector<8x128xf32>
    %cst_1 = arith.constant 0.000000e+00 : f32
    %4 = vector.broadcast %cst_1 : f32 to vector<8x128xf32>
    %5 = arith.cmpf oeq, %1, %4 : vector<8x128xf32>
    %c4_2 = arith.constant 4 : index
    %c0_3 = arith.constant 0 : index
    %c0_4 = arith.constant 0 : index
    %6 = vector.load %arg1[%c4_2, %c0_3, %c0_4] : memref<30x8x128xf32, #tpu.memory_space<vmem>>, vector<1x8x128xf32>
    %7 = vector.shape_cast %6 : vector<1x8x128xf32> to vector<8x128xf32>
    %8 = arith.subf %7, %1 : vector<8x128xf32>
    %9 = arith.mulf %8, %8 : vector<8x128xf32>
    %c9 = arith.constant 9 : index
    %c0_5 = arith.constant 0 : index
    %c0_6 = arith.constant 0 : index
    %10 = vector.load %arg1[%c9, %c0_5, %c0_6] : memref<30x8x128xf32, #tpu.memory_space<vmem>>, vector<1x8x128xf32>
    %11 = vector.shape_cast %10 : vector<1x8x128xf32> to vector<8x128xf32>
    %c9_7 = arith.constant 9 : index
    %c0_8 = arith.constant 0 : index
    %c0_9 = arith.constant 0 : index
    %12 = vector.load %arg2[%c9_7, %c0_8, %c0_9] : memref<30x8x128xf32, #tpu.memory_space<vmem>>, vector<1x8x128xf32>
    %13 = vector.shape_cast %12 : vector<1x8x128xf32> to vector<8x128xf32>
    %14 = arith.subf %11, %13 : vector<8x128xf32>
    %15 = arith.mulf %14, %14 : vector<8x128xf32>
    %16 = arith.addf %9, %15 : vector<8x128xf32>
    %cst_10 = arith.constant 0.000000e+00 : f32
    %17 = vector.broadcast %cst_10 : f32 to vector<8x128xf32>
    %c10 = arith.constant 10 : index
    %c0_11 = arith.constant 0 : index
    %c0_12 = arith.constant 0 : index
    %18 = vector.load %arg1[%c10, %c0_11, %c0_12] : memref<30x8x128xf32, #tpu.memory_space<vmem>>, vector<1x8x128xf32>
    %19 = vector.shape_cast %18 : vector<1x8x128xf32> to vector<8x128xf32>
    %c10_13 = arith.constant 10 : index
    %c0_14 = arith.constant 0 : index
    %c0_15 = arith.constant 0 : index
    %20 = vector.load %arg2[%c10_13, %c0_14, %c0_15] : memref<30x8x128xf32, #tpu.memory_space<vmem>>, vector<1x8x128xf32>
    %21 = vector.shape_cast %20 : vector<1x8x128xf32> to vector<8x128xf32>
    %22 = arith.subf %19, %21 : vector<8x128xf32>
    %23 = arith.mulf %22, %22 : vector<8x128xf32>
    %24 = arith.addf %17, %23 : vector<8x128xf32>
    %c11 = arith.constant 11 : index
    %c0_16 = arith.constant 0 : index
    %c0_17 = arith.constant 0 : index
    %25 = vector.load %arg1[%c11, %c0_16, %c0_17] : memref<30x8x128xf32, #tpu.memory_space<vmem>>, vector<1x8x128xf32>
    %26 = vector.shape_cast %25 : vector<1x8x128xf32> to vector<8x128xf32>
    %c11_18 = arith.constant 11 : index
    %c0_19 = arith.constant 0 : index
    %c0_20 = arith.constant 0 : index
    %27 = vector.load %arg2[%c11_18, %c0_19, %c0_20] : memref<30x8x128xf32, #tpu.memory_space<vmem>>, vector<1x8x128xf32>
    %28 = vector.shape_cast %27 : vector<1x8x128xf32> to vector<8x128xf32>
    %29 = arith.subf %26, %28 : vector<8x128xf32>
    %30 = arith.mulf %29, %29 : vector<8x128xf32>
    %31 = arith.addf %24, %30 : vector<8x128xf32>
    %c12 = arith.constant 12 : index
    %c0_21 = arith.constant 0 : index
    %c0_22 = arith.constant 0 : index
    %32 = vector.load %arg1[%c12, %c0_21, %c0_22] : memref<30x8x128xf32, #tpu.memory_space<vmem>>, vector<1x8x128xf32>
    %33 = vector.shape_cast %32 : vector<1x8x128xf32> to vector<8x128xf32>
    %c12_23 = arith.constant 12 : index
    %c0_24 = arith.constant 0 : index
    %c0_25 = arith.constant 0 : index
    %34 = vector.load %arg2[%c12_23, %c0_24, %c0_25] : memref<30x8x128xf32, #tpu.memory_space<vmem>>, vector<1x8x128xf32>
    %35 = vector.shape_cast %34 : vector<1x8x128xf32> to vector<8x128xf32>
    %36 = arith.subf %33, %35 : vector<8x128xf32>
    %37 = arith.mulf %36, %36 : vector<8x128xf32>
    %38 = arith.addf %31, %37 : vector<8x128xf32>
    %c13 = arith.constant 13 : index
    %c0_26 = arith.constant 0 : index
    %c0_27 = arith.constant 0 : index
    %39 = vector.load %arg1[%c13, %c0_26, %c0_27] : memref<30x8x128xf32, #tpu.memory_space<vmem>>, vector<1x8x128xf32>
    %40 = vector.shape_cast %39 : vector<1x8x128xf32> to vector<8x128xf32>
    %c13_28 = arith.constant 13 : index
    %c0_29 = arith.constant 0 : index
    %c0_30 = arith.constant 0 : index
    %41 = vector.load %arg2[%c13_28, %c0_29, %c0_30] : memref<30x8x128xf32, #tpu.memory_space<vmem>>, vector<1x8x128xf32>
    %42 = vector.shape_cast %41 : vector<1x8x128xf32> to vector<8x128xf32>
    %43 = arith.subf %40, %42 : vector<8x128xf32>
    %44 = arith.mulf %43, %43 : vector<8x128xf32>
    %45 = arith.addf %38, %44 : vector<8x128xf32>
    %c14 = arith.constant 14 : index
    %c0_31 = arith.constant 0 : index
    %c0_32 = arith.constant 0 : index
    %46 = vector.load %arg1[%c14, %c0_31, %c0_32] : memref<30x8x128xf32, #tpu.memory_space<vmem>>, vector<1x8x128xf32>
    %47 = vector.shape_cast %46 : vector<1x8x128xf32> to vector<8x128xf32>
    %c14_33 = arith.constant 14 : index
    %c0_34 = arith.constant 0 : index
    %c0_35 = arith.constant 0 : index
    %48 = vector.load %arg2[%c14_33, %c0_34, %c0_35] : memref<30x8x128xf32, #tpu.memory_space<vmem>>, vector<1x8x128xf32>
    %49 = vector.shape_cast %48 : vector<1x8x128xf32> to vector<8x128xf32>
    %50 = arith.subf %47, %49 : vector<8x128xf32>
    %51 = arith.mulf %50, %50 : vector<8x128xf32>
    %52 = arith.addf %45, %51 : vector<8x128xf32>
    %c15 = arith.constant 15 : index
    %c0_36 = arith.constant 0 : index
    %c0_37 = arith.constant 0 : index
    %53 = vector.load %arg1[%c15, %c0_36, %c0_37] : memref<30x8x128xf32, #tpu.memory_space<vmem>>, vector<1x8x128xf32>
    %54 = vector.shape_cast %53 : vector<1x8x128xf32> to vector<8x128xf32>
    %c15_38 = arith.constant 15 : index
    %c0_39 = arith.constant 0 : index
    %c0_40 = arith.constant 0 : index
    %55 = vector.load %arg2[%c15_38, %c0_39, %c0_40] : memref<30x8x128xf32, #tpu.memory_space<vmem>>, vector<1x8x128xf32>
    %56 = vector.shape_cast %55 : vector<1x8x128xf32> to vector<8x128xf32>
    %57 = arith.subf %54, %56 : vector<8x128xf32>
    %58 = arith.mulf %57, %57 : vector<8x128xf32>
    %59 = arith.addf %52, %58 : vector<8x128xf32>
    %c16 = arith.constant 16 : index
    %c0_41 = arith.constant 0 : index
    %c0_42 = arith.constant 0 : index
    %60 = vector.load %arg1[%c16, %c0_41, %c0_42] : memref<30x8x128xf32, #tpu.memory_space<vmem>>, vector<1x8x128xf32>
    %61 = vector.shape_cast %60 : vector<1x8x128xf32> to vector<8x128xf32>
    %c16_43 = arith.constant 16 : index
    %c0_44 = arith.constant 0 : index
    %c0_45 = arith.constant 0 : index
    %62 = vector.load %arg2[%c16_43, %c0_44, %c0_45] : memref<30x8x128xf32, #tpu.memory_space<vmem>>, vector<1x8x128xf32>
    %63 = vector.shape_cast %62 : vector<1x8x128xf32> to vector<8x128xf32>
    %64 = arith.subf %61, %63 : vector<8x128xf32>
    %65 = arith.mulf %64, %64 : vector<8x128xf32>
    %66 = arith.addf %59, %65 : vector<8x128xf32>
    %c17 = arith.constant 17 : index
    %c0_46 = arith.constant 0 : index
    %c0_47 = arith.constant 0 : index
    %67 = vector.load %arg1[%c17, %c0_46, %c0_47] : memref<30x8x128xf32, #tpu.memory_space<vmem>>, vector<1x8x128xf32>
    %68 = vector.shape_cast %67 : vector<1x8x128xf32> to vector<8x128xf32>
    %c17_48 = arith.constant 17 : index
    %c0_49 = arith.constant 0 : index
    %c0_50 = arith.constant 0 : index
    %69 = vector.load %arg2[%c17_48, %c0_49, %c0_50] : memref<30x8x128xf32, #tpu.memory_space<vmem>>, vector<1x8x128xf32>
    %70 = vector.shape_cast %69 : vector<1x8x128xf32> to vector<8x128xf32>
    %71 = arith.subf %68, %70 : vector<8x128xf32>
    %72 = arith.mulf %71, %71 : vector<8x128xf32>
    %73 = arith.addf %66, %72 : vector<8x128xf32>
    %c18 = arith.constant 18 : index
    %c0_51 = arith.constant 0 : index
    %c0_52 = arith.constant 0 : index
    %74 = vector.load %arg1[%c18, %c0_51, %c0_52] : memref<30x8x128xf32, #tpu.memory_space<vmem>>, vector<1x8x128xf32>
    %75 = vector.shape_cast %74 : vector<1x8x128xf32> to vector<8x128xf32>
    %c18_53 = arith.constant 18 : index
    %c0_54 = arith.constant 0 : index
    %c0_55 = arith.constant 0 : index
    %76 = vector.load %arg2[%c18_53, %c0_54, %c0_55] : memref<30x8x128xf32, #tpu.memory_space<vmem>>, vector<1x8x128xf32>
    %77 = vector.shape_cast %76 : vector<1x8x128xf32> to vector<8x128xf32>
    %78 = arith.subf %75, %77 : vector<8x128xf32>
    %79 = arith.mulf %78, %78 : vector<8x128xf32>
    %80 = arith.addf %73, %79 : vector<8x128xf32>
    %c19 = arith.constant 19 : index
    %c0_56 = arith.constant 0 : index
    %c0_57 = arith.constant 0 : index
    %81 = vector.load %arg1[%c19, %c0_56, %c0_57] : memref<30x8x128xf32, #tpu.memory_space<vmem>>, vector<1x8x128xf32>
    %82 = vector.shape_cast %81 : vector<1x8x128xf32> to vector<8x128xf32>
    %c19_58 = arith.constant 19 : index
    %c0_59 = arith.constant 0 : index
    %c0_60 = arith.constant 0 : index
    %83 = vector.load %arg2[%c19_58, %c0_59, %c0_60] : memref<30x8x128xf32, #tpu.memory_space<vmem>>, vector<1x8x128xf32>
    %84 = vector.shape_cast %83 : vector<1x8x128xf32> to vector<8x128xf32>
    %85 = arith.subf %82, %84 : vector<8x128xf32>
    %86 = arith.mulf %85, %85 : vector<8x128xf32>
    %87 = arith.addf %80, %86 : vector<8x128xf32>
    %c20 = arith.constant 20 : index
    %c0_61 = arith.constant 0 : index
    %c0_62 = arith.constant 0 : index
    %88 = vector.load %arg1[%c20, %c0_61, %c0_62] : memref<30x8x128xf32, #tpu.memory_space<vmem>>, vector<1x8x128xf32>
    %89 = vector.shape_cast %88 : vector<1x8x128xf32> to vector<8x128xf32>
    %c20_63 = arith.constant 20 : index
    %c0_64 = arith.constant 0 : index
    %c0_65 = arith.constant 0 : index
    %90 = vector.load %arg2[%c20_63, %c0_64, %c0_65] : memref<30x8x128xf32, #tpu.memory_space<vmem>>, vector<1x8x128xf32>
    %91 = vector.shape_cast %90 : vector<1x8x128xf32> to vector<8x128xf32>
    %92 = arith.subf %89, %91 : vector<8x128xf32>
    %93 = arith.mulf %92, %92 : vector<8x128xf32>
    %94 = arith.addf %87, %93 : vector<8x128xf32>
    %c21 = arith.constant 21 : index
    %c0_66 = arith.constant 0 : index
    %c0_67 = arith.constant 0 : index
    %95 = vector.load %arg1[%c21, %c0_66, %c0_67] : memref<30x8x128xf32, #tpu.memory_space<vmem>>, vector<1x8x128xf32>
    %96 = vector.shape_cast %95 : vector<1x8x128xf32> to vector<8x128xf32>
    %c21_68 = arith.constant 21 : index
    %c0_69 = arith.constant 0 : index
    %c0_70 = arith.constant 0 : index
    %97 = vector.load %arg2[%c21_68, %c0_69, %c0_70] : memref<30x8x128xf32, #tpu.memory_space<vmem>>, vector<1x8x128xf32>
    %98 = vector.shape_cast %97 : vector<1x8x128xf32> to vector<8x128xf32>
    %99 = arith.subf %96, %98 : vector<8x128xf32>
    %100 = arith.mulf %99, %99 : vector<8x128xf32>
    %101 = arith.addf %94, %100 : vector<8x128xf32>
    %c22 = arith.constant 22 : index
    %c0_71 = arith.constant 0 : index
    %c0_72 = arith.constant 0 : index
    %102 = vector.load %arg1[%c22, %c0_71, %c0_72] : memref<30x8x128xf32, #tpu.memory_space<vmem>>, vector<1x8x128xf32>
    %103 = vector.shape_cast %102 : vector<1x8x128xf32> to vector<8x128xf32>
    %c22_73 = arith.constant 22 : index
    %c0_74 = arith.constant 0 : index
    %c0_75 = arith.constant 0 : index
    %104 = vector.load %arg2[%c22_73, %c0_74, %c0_75] : memref<30x8x128xf32, #tpu.memory_space<vmem>>, vector<1x8x128xf32>
    %105 = vector.shape_cast %104 : vector<1x8x128xf32> to vector<8x128xf32>
    %106 = arith.subf %103, %105 : vector<8x128xf32>
    %107 = arith.mulf %106, %106 : vector<8x128xf32>
    %108 = arith.addf %101, %107 : vector<8x128xf32>
    %c23 = arith.constant 23 : index
    %c0_76 = arith.constant 0 : index
    %c0_77 = arith.constant 0 : index
    %109 = vector.load %arg1[%c23, %c0_76, %c0_77] : memref<30x8x128xf32, #tpu.memory_space<vmem>>, vector<1x8x128xf32>
    %110 = vector.shape_cast %109 : vector<1x8x128xf32> to vector<8x128xf32>
    %c23_78 = arith.constant 23 : index
    %c0_79 = arith.constant 0 : index
    %c0_80 = arith.constant 0 : index
    %111 = vector.load %arg2[%c23_78, %c0_79, %c0_80] : memref<30x8x128xf32, #tpu.memory_space<vmem>>, vector<1x8x128xf32>
    %112 = vector.shape_cast %111 : vector<1x8x128xf32> to vector<8x128xf32>
    %113 = arith.subf %110, %112 : vector<8x128xf32>
    %114 = arith.mulf %113, %113 : vector<8x128xf32>
    %115 = arith.addf %108, %114 : vector<8x128xf32>
    %c24 = arith.constant 24 : index
    %c0_81 = arith.constant 0 : index
    %c0_82 = arith.constant 0 : index
    %116 = vector.load %arg1[%c24, %c0_81, %c0_82] : memref<30x8x128xf32, #tpu.memory_space<vmem>>, vector<1x8x128xf32>
    %117 = vector.shape_cast %116 : vector<1x8x128xf32> to vector<8x128xf32>
    %c24_83 = arith.constant 24 : index
    %c0_84 = arith.constant 0 : index
    %c0_85 = arith.constant 0 : index
    %118 = vector.load %arg2[%c24_83, %c0_84, %c0_85] : memref<30x8x128xf32, #tpu.memory_space<vmem>>, vector<1x8x128xf32>
    %119 = vector.shape_cast %118 : vector<1x8x128xf32> to vector<8x128xf32>
    %120 = arith.subf %117, %119 : vector<8x128xf32>
    %121 = arith.mulf %120, %120 : vector<8x128xf32>
    %122 = arith.addf %115, %121 : vector<8x128xf32>
    %c25 = arith.constant 25 : index
    %c0_86 = arith.constant 0 : index
    %c0_87 = arith.constant 0 : index
    %123 = vector.load %arg1[%c25, %c0_86, %c0_87] : memref<30x8x128xf32, #tpu.memory_space<vmem>>, vector<1x8x128xf32>
    %124 = vector.shape_cast %123 : vector<1x8x128xf32> to vector<8x128xf32>
    %c25_88 = arith.constant 25 : index
    %c0_89 = arith.constant 0 : index
    %c0_90 = arith.constant 0 : index
    %125 = vector.load %arg2[%c25_88, %c0_89, %c0_90] : memref<30x8x128xf32, #tpu.memory_space<vmem>>, vector<1x8x128xf32>
    %126 = vector.shape_cast %125 : vector<1x8x128xf32> to vector<8x128xf32>
    %127 = arith.subf %124, %126 : vector<8x128xf32>
    %128 = arith.mulf %127, %127 : vector<8x128xf32>
    %129 = arith.addf %122, %128 : vector<8x128xf32>
    %c26 = arith.constant 26 : index
    %c0_91 = arith.constant 0 : index
    %c0_92 = arith.constant 0 : index
    %130 = vector.load %arg1[%c26, %c0_91, %c0_92] : memref<30x8x128xf32, #tpu.memory_space<vmem>>, vector<1x8x128xf32>
    %131 = vector.shape_cast %130 : vector<1x8x128xf32> to vector<8x128xf32>
    %c26_93 = arith.constant 26 : index
    %c0_94 = arith.constant 0 : index
    %c0_95 = arith.constant 0 : index
    %132 = vector.load %arg2[%c26_93, %c0_94, %c0_95] : memref<30x8x128xf32, #tpu.memory_space<vmem>>, vector<1x8x128xf32>
    %133 = vector.shape_cast %132 : vector<1x8x128xf32> to vector<8x128xf32>
    %134 = arith.subf %131, %133 : vector<8x128xf32>
    %135 = arith.mulf %134, %134 : vector<8x128xf32>
    %136 = arith.addf %129, %135 : vector<8x128xf32>
    %c27 = arith.constant 27 : index
    %c0_96 = arith.constant 0 : index
    %c0_97 = arith.constant 0 : index
    %137 = vector.load %arg1[%c27, %c0_96, %c0_97] : memref<30x8x128xf32, #tpu.memory_space<vmem>>, vector<1x8x128xf32>
    %138 = vector.shape_cast %137 : vector<1x8x128xf32> to vector<8x128xf32>
    %c27_98 = arith.constant 27 : index
    %c0_99 = arith.constant 0 : index
    %c0_100 = arith.constant 0 : index
    %139 = vector.load %arg2[%c27_98, %c0_99, %c0_100] : memref<30x8x128xf32, #tpu.memory_space<vmem>>, vector<1x8x128xf32>
    %140 = vector.shape_cast %139 : vector<1x8x128xf32> to vector<8x128xf32>
    %141 = arith.subf %138, %140 : vector<8x128xf32>
    %142 = arith.mulf %141, %141 : vector<8x128xf32>
    %143 = arith.addf %136, %142 : vector<8x128xf32>
    %c28 = arith.constant 28 : index
    %c0_101 = arith.constant 0 : index
    %c0_102 = arith.constant 0 : index
    %144 = vector.load %arg1[%c28, %c0_101, %c0_102] : memref<30x8x128xf32, #tpu.memory_space<vmem>>, vector<1x8x128xf32>
    %145 = vector.shape_cast %144 : vector<1x8x128xf32> to vector<8x128xf32>
    %c28_103 = arith.constant 28 : index
    %c0_104 = arith.constant 0 : index
    %c0_105 = arith.constant 0 : index
    %146 = vector.load %arg2[%c28_103, %c0_104, %c0_105] : memref<30x8x128xf32, #tpu.memory_space<vmem>>, vector<1x8x128xf32>
    %147 = vector.shape_cast %146 : vector<1x8x128xf32> to vector<8x128xf32>
    %148 = arith.subf %145, %147 : vector<8x128xf32>
    %149 = arith.mulf %148, %148 : vector<8x128xf32>
    %150 = arith.addf %143, %149 : vector<8x128xf32>
    %c29 = arith.constant 29 : index
    %c0_106 = arith.constant 0 : index
    %c0_107 = arith.constant 0 : index
    %151 = vector.load %arg1[%c29, %c0_106, %c0_107] : memref<30x8x128xf32, #tpu.memory_space<vmem>>, vector<1x8x128xf32>
    %152 = vector.shape_cast %151 : vector<1x8x128xf32> to vector<8x128xf32>
    %c29_108 = arith.constant 29 : index
    %c0_109 = arith.constant 0 : index
    %c0_110 = arith.constant 0 : index
    %153 = vector.load %arg2[%c29_108, %c0_109, %c0_110] : memref<30x8x128xf32, #tpu.memory_space<vmem>>, vector<1x8x128xf32>
    %154 = vector.shape_cast %153 : vector<1x8x128xf32> to vector<8x128xf32>
    %155 = arith.subf %152, %154 : vector<8x128xf32>
    %156 = arith.mulf %155, %155 : vector<8x128xf32>
    %157 = arith.addf %150, %156 : vector<8x128xf32>
    %c0_111 = arith.constant 0 : index
    %c0_112 = arith.constant 0 : index
    %c0_113 = arith.constant 0 : index
    %158 = vector.load %arg2[%c0_111, %c0_112, %c0_113] : memref<30x8x128xf32, #tpu.memory_space<vmem>>, vector<1x8x128xf32>
    %159 = vector.shape_cast %158 : vector<1x8x128xf32> to vector<8x128xf32>
    %cst_114 = arith.constant 7.000000e+00 : f32
    %160 = vector.broadcast %cst_114 : f32 to vector<8x128xf32>
    %161 = arith.divf %159, %160 : vector<8x128xf32>
    %c1 = arith.constant 1 : index
    %c0_115 = arith.constant 0 : index
    %c0_116 = arith.constant 0 : index
    %162 = vector.load %arg2[%c1, %c0_115, %c0_116] : memref<30x8x128xf32, #tpu.memory_space<vmem>>, vector<1x8x128xf32>
    %163 = vector.shape_cast %162 : vector<1x8x128xf32> to vector<8x128xf32>
    %cst_117 = arith.constant 7.000000e+00 : f32
    %164 = vector.broadcast %cst_117 : f32 to vector<8x128xf32>
    %165 = arith.divf %163, %164 : vector<8x128xf32>
    %c2 = arith.constant 2 : index
    %c0_118 = arith.constant 0 : index
    %c0_119 = arith.constant 0 : index
    %166 = vector.load %arg2[%c2, %c0_118, %c0_119] : memref<30x8x128xf32, #tpu.memory_space<vmem>>, vector<1x8x128xf32>
    %167 = vector.shape_cast %166 : vector<1x8x128xf32> to vector<8x128xf32>
    %c3 = arith.constant 3 : index
    %c0_120 = arith.constant 0 : index
    %c0_121 = arith.constant 0 : index
    %168 = vector.load %arg2[%c3, %c0_120, %c0_121] : memref<30x8x128xf32, #tpu.memory_space<vmem>>, vector<1x8x128xf32>
    %169 = vector.shape_cast %168 : vector<1x8x128xf32> to vector<8x128xf32>
    %cst_122 = arith.constant 5.000000e-01 : f32
    %170 = vector.broadcast %cst_122 : f32 to vector<8x128xf32>
    %171 = arith.mulf %170, %167 : vector<8x128xf32>
    %172 = arith.subf %161, %171 : vector<8x128xf32>
    %cst_123 = arith.constant 5.000000e-01 : f32
    %173 = vector.broadcast %cst_123 : f32 to vector<8x128xf32>
    %174 = arith.mulf %173, %167 : vector<8x128xf32>
    %175 = arith.addf %161, %174 : vector<8x128xf32>
    %cst_124 = arith.constant 5.000000e-01 : f32
    %176 = vector.broadcast %cst_124 : f32 to vector<8x128xf32>
    %177 = arith.mulf %176, %169 : vector<8x128xf32>
    %178 = arith.subf %165, %177 : vector<8x128xf32>
    %cst_125 = arith.constant 5.000000e-01 : f32
    %179 = vector.broadcast %cst_125 : f32 to vector<8x128xf32>
    %180 = arith.mulf %179, %169 : vector<8x128xf32>
    %181 = arith.addf %165, %180 : vector<8x128xf32>
    %182 = arith.subf %175, %172 : vector<8x128xf32>
    %183 = arith.subf %181, %178 : vector<8x128xf32>
    %184 = arith.mulf %182, %183 : vector<8x128xf32>
    %c0_126 = arith.constant 0 : index
    %c0_127 = arith.constant 0 : index
    %c0_128 = arith.constant 0 : index
    %185 = vector.load %arg1[%c0_126, %c0_127, %c0_128] : memref<30x8x128xf32, #tpu.memory_space<vmem>>, vector<1x8x128xf32>
    %186 = vector.shape_cast %185 : vector<1x8x128xf32> to vector<8x128xf32>
    %cst_129 = arith.constant 7.000000e+00 : f32
    %187 = vector.broadcast %cst_129 : f32 to vector<8x128xf32>
    %188 = arith.divf %186, %187 : vector<8x128xf32>
    %c1_130 = arith.constant 1 : index
    %c0_131 = arith.constant 0 : index
    %c0_132 = arith.constant 0 : index
    %189 = vector.load %arg1[%c1_130, %c0_131, %c0_132] : memref<30x8x128xf32, #tpu.memory_space<vmem>>, vector<1x8x128xf32>
    %190 = vector.shape_cast %189 : vector<1x8x128xf32> to vector<8x128xf32>
    %cst_133 = arith.constant 7.000000e+00 : f32
    %191 = vector.broadcast %cst_133 : f32 to vector<8x128xf32>
    %192 = arith.divf %190, %191 : vector<8x128xf32>
    %c2_134 = arith.constant 2 : index
    %c0_135 = arith.constant 0 : index
    %c0_136 = arith.constant 0 : index
    %193 = vector.load %arg1[%c2_134, %c0_135, %c0_136] : memref<30x8x128xf32, #tpu.memory_space<vmem>>, vector<1x8x128xf32>
    %194 = vector.shape_cast %193 : vector<1x8x128xf32> to vector<8x128xf32>
    %c3_137 = arith.constant 3 : index
    %c0_138 = arith.constant 0 : index
    %c0_139 = arith.constant 0 : index
    %195 = vector.load %arg1[%c3_137, %c0_138, %c0_139] : memref<30x8x128xf32, #tpu.memory_space<vmem>>, vector<1x8x128xf32>
    %196 = vector.shape_cast %195 : vector<1x8x128xf32> to vector<8x128xf32>
    %cst_140 = arith.constant 5.000000e-01 : f32
    %197 = vector.broadcast %cst_140 : f32 to vector<8x128xf32>
    %198 = arith.mulf %197, %194 : vector<8x128xf32>
    %199 = arith.subf %188, %198 : vector<8x128xf32>
    %cst_141 = arith.constant 5.000000e-01 : f32
    %200 = vector.broadcast %cst_141 : f32 to vector<8x128xf32>
    %201 = arith.mulf %200, %194 : vector<8x128xf32>
    %202 = arith.addf %188, %201 : vector<8x128xf32>
    %cst_142 = arith.constant 5.000000e-01 : f32
    %203 = vector.broadcast %cst_142 : f32 to vector<8x128xf32>
    %204 = arith.mulf %203, %196 : vector<8x128xf32>
    %205 = arith.subf %192, %204 : vector<8x128xf32>
    %cst_143 = arith.constant 5.000000e-01 : f32
    %206 = vector.broadcast %cst_143 : f32 to vector<8x128xf32>
    %207 = arith.mulf %206, %196 : vector<8x128xf32>
    %208 = arith.addf %192, %207 : vector<8x128xf32>
    %209 = arith.minimumf %202, %175 : vector<8x128xf32>
    %210 = arith.maximumf %199, %172 : vector<8x128xf32>
    %211 = arith.subf %209, %210 : vector<8x128xf32>
    %cst_144 = arith.constant 0.000000e+00 : f32
    %212 = vector.broadcast %cst_144 : f32 to vector<8x128xf32>
    %213 = arith.maximumf %211, %212 : vector<8x128xf32>
    %214 = arith.minimumf %208, %181 : vector<8x128xf32>
    %215 = arith.maximumf %205, %178 : vector<8x128xf32>
    %216 = arith.subf %214, %215 : vector<8x128xf32>
    %cst_145 = arith.constant 0.000000e+00 : f32
    %217 = vector.broadcast %cst_145 : f32 to vector<8x128xf32>
    %218 = arith.maximumf %216, %217 : vector<8x128xf32>
    %219 = arith.mulf %213, %218 : vector<8x128xf32>
    %220 = arith.subf %202, %199 : vector<8x128xf32>
    %221 = arith.subf %208, %205 : vector<8x128xf32>
    %222 = arith.mulf %220, %221 : vector<8x128xf32>
    %223 = arith.addf %222, %184 : vector<8x128xf32>
    %224 = arith.subf %223, %219 : vector<8x128xf32>
    %225 = arith.divf %219, %224 : vector<8x128xf32>
    %c5 = arith.constant 5 : index
    %c0_146 = arith.constant 0 : index
    %c0_147 = arith.constant 0 : index
    %226 = vector.load %arg1[%c5, %c0_146, %c0_147] : memref<30x8x128xf32, #tpu.memory_space<vmem>>, vector<1x8x128xf32>
    %227 = vector.shape_cast %226 : vector<1x8x128xf32> to vector<8x128xf32>
    %cst_148 = arith.constant 7.000000e+00 : f32
    %228 = vector.broadcast %cst_148 : f32 to vector<8x128xf32>
    %229 = arith.divf %227, %228 : vector<8x128xf32>
    %c6 = arith.constant 6 : index
    %c0_149 = arith.constant 0 : index
    %c0_150 = arith.constant 0 : index
    %230 = vector.load %arg1[%c6, %c0_149, %c0_150] : memref<30x8x128xf32, #tpu.memory_space<vmem>>, vector<1x8x128xf32>
    %231 = vector.shape_cast %230 : vector<1x8x128xf32> to vector<8x128xf32>
    %cst_151 = arith.constant 7.000000e+00 : f32
    %232 = vector.broadcast %cst_151 : f32 to vector<8x128xf32>
    %233 = arith.divf %231, %232 : vector<8x128xf32>
    %c7 = arith.constant 7 : index
    %c0_152 = arith.constant 0 : index
    %c0_153 = arith.constant 0 : index
    %234 = vector.load %arg1[%c7, %c0_152, %c0_153] : memref<30x8x128xf32, #tpu.memory_space<vmem>>, vector<1x8x128xf32>
    %235 = vector.shape_cast %234 : vector<1x8x128xf32> to vector<8x128xf32>
    %c8 = arith.constant 8 : index
    %c0_154 = arith.constant 0 : index
    %c0_155 = arith.constant 0 : index
    %236 = vector.load %arg1[%c8, %c0_154, %c0_155] : memref<30x8x128xf32, #tpu.memory_space<vmem>>, vector<1x8x128xf32>
    %237 = vector.shape_cast %236 : vector<1x8x128xf32> to vector<8x128xf32>
    %cst_156 = arith.constant 5.000000e-01 : f32
    %238 = vector.broadcast %cst_156 : f32 to vector<8x128xf32>
    %239 = arith.mulf %238, %235 : vector<8x128xf32>
    %240 = arith.subf %229, %239 : vector<8x128xf32>
    %cst_157 = arith.constant 5.000000e-01 : f32
    %241 = vector.broadcast %cst_157 : f32 to vector<8x128xf32>
    %242 = arith.mulf %241, %235 : vector<8x128xf32>
    %243 = arith.addf %229, %242 : vector<8x128xf32>
    %cst_158 = arith.constant 5.000000e-01 : f32
    %244 = vector.broadcast %cst_158 : f32 to vector<8x128xf32>
    %245 = arith.mulf %244, %237 : vector<8x128xf32>
    %246 = arith.subf %233, %245 : vector<8x128xf32>
    %cst_159 = arith.constant 5.000000e-01 : f32
    %247 = vector.broadcast %cst_159 : f32 to vector<8x128xf32>
    %248 = arith.mulf %247, %237 : vector<8x128xf32>
    %249 = arith.addf %233, %248 : vector<8x128xf32>
    %250 = arith.minimumf %243, %175 : vector<8x128xf32>
    %251 = arith.maximumf %240, %172 : vector<8x128xf32>
    %252 = arith.subf %250, %251 : vector<8x128xf32>
    %cst_160 = arith.constant 0.000000e+00 : f32
    %253 = vector.broadcast %cst_160 : f32 to vector<8x128xf32>
    %254 = arith.maximumf %252, %253 : vector<8x128xf32>
    %255 = arith.minimumf %249, %181 : vector<8x128xf32>
    %256 = arith.maximumf %246, %178 : vector<8x128xf32>
    %257 = arith.subf %255, %256 : vector<8x128xf32>
    %cst_161 = arith.constant 0.000000e+00 : f32
    %258 = vector.broadcast %cst_161 : f32 to vector<8x128xf32>
    %259 = arith.maximumf %257, %258 : vector<8x128xf32>
    %260 = arith.mulf %254, %259 : vector<8x128xf32>
    %261 = arith.subf %243, %240 : vector<8x128xf32>
    %262 = arith.subf %249, %246 : vector<8x128xf32>
    %263 = arith.mulf %261, %262 : vector<8x128xf32>
    %264 = arith.addf %263, %184 : vector<8x128xf32>
    %265 = arith.subf %264, %260 : vector<8x128xf32>
    %266 = arith.divf %260, %265 : vector<8x128xf32>
    %267 = arith.cmpf ogt, %266, %225 : vector<8x128xf32>
    %268 = arith.select %267, %266, %225 : vector<8x128xi1>, vector<8x128xf32>
    %c9_162 = arith.constant 9 : index
    %c0_163 = arith.constant 0 : index
    %c0_164 = arith.constant 0 : index
    %269 = vector.load %arg1[%c9_162, %c0_163, %c0_164] : memref<30x8x128xf32, #tpu.memory_space<vmem>>, vector<1x8x128xf32>
    %270 = vector.shape_cast %269 : vector<1x8x128xf32> to vector<8x128xf32>
    %c4_165 = arith.constant 4 : index
    %c0_166 = arith.constant 0 : index
    %c0_167 = arith.constant 0 : index
    %271 = vector.load %arg1[%c4_165, %c0_166, %c0_167] : memref<30x8x128xf32, #tpu.memory_space<vmem>>, vector<1x8x128xf32>
    %272 = vector.shape_cast %271 : vector<1x8x128xf32> to vector<8x128xf32>
    %273 = arith.select %267, %270, %272 : vector<8x128xi1>, vector<8x128xf32>
    %274 = arith.subf %273, %268 : vector<8x128xf32>
    %275 = arith.mulf %274, %274 : vector<8x128xf32>
    %c5_168 = arith.constant 5 : index
    %c0_169 = arith.constant 0 : index
    %c0_170 = arith.constant 0 : index
    %276 = vector.load %arg1[%c5_168, %c0_169, %c0_170] : memref<30x8x128xf32, #tpu.memory_space<vmem>>, vector<1x8x128xf32>
    %277 = vector.shape_cast %276 : vector<1x8x128xf32> to vector<8x128xf32>
    %c0_171 = arith.constant 0 : index
    %c0_172 = arith.constant 0 : index
    %c0_173 = arith.constant 0 : index
    %278 = vector.load %arg1[%c0_171, %c0_172, %c0_173] : memref<30x8x128xf32, #tpu.memory_space<vmem>>, vector<1x8x128xf32>
    %279 = vector.shape_cast %278 : vector<1x8x128xf32> to vector<8x128xf32>
    %280 = arith.select %267, %277, %279 : vector<8x128xi1>, vector<8x128xf32>
    %c5_174 = arith.constant 5 : index
    %c0_175 = arith.constant 0 : index
    %c0_176 = arith.constant 0 : index
    %281 = vector.load %arg2[%c5_174, %c0_175, %c0_176] : memref<30x8x128xf32, #tpu.memory_space<vmem>>, vector<1x8x128xf32>
    %282 = vector.shape_cast %281 : vector<1x8x128xf32> to vector<8x128xf32>
    %c0_177 = arith.constant 0 : index
    %c0_178 = arith.constant 0 : index
    %c0_179 = arith.constant 0 : index
    %283 = vector.load %arg2[%c0_177, %c0_178, %c0_179] : memref<30x8x128xf32, #tpu.memory_space<vmem>>, vector<1x8x128xf32>
    %284 = vector.shape_cast %283 : vector<1x8x128xf32> to vector<8x128xf32>
    %285 = arith.select %267, %282, %284 : vector<8x128xi1>, vector<8x128xf32>
    %286 = arith.subf %280, %285 : vector<8x128xf32>
    %287 = arith.mulf %286, %286 : vector<8x128xf32>
    %c6_180 = arith.constant 6 : index
    %c0_181 = arith.constant 0 : index
    %c0_182 = arith.constant 0 : index
    %288 = vector.load %arg1[%c6_180, %c0_181, %c0_182] : memref<30x8x128xf32, #tpu.memory_space<vmem>>, vector<1x8x128xf32>
    %289 = vector.shape_cast %288 : vector<1x8x128xf32> to vector<8x128xf32>
    %c1_183 = arith.constant 1 : index
    %c0_184 = arith.constant 0 : index
    %c0_185 = arith.constant 0 : index
    %290 = vector.load %arg1[%c1_183, %c0_184, %c0_185] : memref<30x8x128xf32, #tpu.memory_space<vmem>>, vector<1x8x128xf32>
    %291 = vector.shape_cast %290 : vector<1x8x128xf32> to vector<8x128xf32>
    %292 = arith.select %267, %289, %291 : vector<8x128xi1>, vector<8x128xf32>
    %c6_186 = arith.constant 6 : index
    %c0_187 = arith.constant 0 : index
    %c0_188 = arith.constant 0 : index
    %293 = vector.load %arg2[%c6_186, %c0_187, %c0_188] : memref<30x8x128xf32, #tpu.memory_space<vmem>>, vector<1x8x128xf32>
    %294 = vector.shape_cast %293 : vector<1x8x128xf32> to vector<8x128xf32>
    %c1_189 = arith.constant 1 : index
    %c0_190 = arith.constant 0 : index
    %c0_191 = arith.constant 0 : index
    %295 = vector.load %arg2[%c1_189, %c0_190, %c0_191] : memref<30x8x128xf32, #tpu.memory_space<vmem>>, vector<1x8x128xf32>
    %296 = vector.shape_cast %295 : vector<1x8x128xf32> to vector<8x128xf32>
    %297 = arith.select %267, %294, %296 : vector<8x128xi1>, vector<8x128xf32>
    %298 = arith.subf %292, %297 : vector<8x128xf32>
    %299 = arith.mulf %298, %298 : vector<8x128xf32>
    %300 = arith.addf %287, %299 : vector<8x128xf32>
    %cst_192 = arith.constant 0.000000e+00 : f32
    %301 = vector.broadcast %cst_192 : f32 to vector<8x128xf32>
    %c7_193 = arith.constant 7 : index
    %c0_194 = arith.constant 0 : index
    %c0_195 = arith.constant 0 : index
    %302 = vector.load %arg1[%c7_193, %c0_194, %c0_195] : memref<30x8x128xf32, #tpu.memory_space<vmem>>, vector<1x8x128xf32>
    %303 = vector.shape_cast %302 : vector<1x8x128xf32> to vector<8x128xf32>
    %c2_196 = arith.constant 2 : index
    %c0_197 = arith.constant 0 : index
    %c0_198 = arith.constant 0 : index
    %304 = vector.load %arg1[%c2_196, %c0_197, %c0_198] : memref<30x8x128xf32, #tpu.memory_space<vmem>>, vector<1x8x128xf32>
    %305 = vector.shape_cast %304 : vector<1x8x128xf32> to vector<8x128xf32>
    %306 = arith.select %267, %303, %305 : vector<8x128xi1>, vector<8x128xf32>
    %307 = arith.select %3, %306, %301 : vector<8x128xi1>, vector<8x128xf32>
    %c7_199 = arith.constant 7 : index
    %c0_200 = arith.constant 0 : index
    %c0_201 = arith.constant 0 : index
    %308 = vector.load %arg2[%c7_199, %c0_200, %c0_201] : memref<30x8x128xf32, #tpu.memory_space<vmem>>, vector<1x8x128xf32>
    %309 = vector.shape_cast %308 : vector<1x8x128xf32> to vector<8x128xf32>
    %c2_202 = arith.constant 2 : index
    %c0_203 = arith.constant 0 : index
    %c0_204 = arith.constant 0 : index
    %310 = vector.load %arg2[%c2_202, %c0_203, %c0_204] : memref<30x8x128xf32, #tpu.memory_space<vmem>>, vector<1x8x128xf32>
    %311 = vector.shape_cast %310 : vector<1x8x128xf32> to vector<8x128xf32>
    %312 = arith.select %267, %309, %311 : vector<8x128xi1>, vector<8x128xf32>
    %313 = arith.select %3, %312, %301 : vector<8x128xi1>, vector<8x128xf32>
    %314 = math.sqrt %307 : vector<8x128xf32>
    %315 = math.sqrt %313 : vector<8x128xf32>
    %316 = arith.subf %314, %315 : vector<8x128xf32>
    %317 = arith.mulf %316, %316 : vector<8x128xf32>
    %318 = arith.addf %301, %317 : vector<8x128xf32>
    %c8_205 = arith.constant 8 : index
    %c0_206 = arith.constant 0 : index
    %c0_207 = arith.constant 0 : index
    %319 = vector.load %arg1[%c8_205, %c0_206, %c0_207] : memref<30x8x128xf32, #tpu.memory_space<vmem>>, vector<1x8x128xf32>
    %320 = vector.shape_cast %319 : vector<1x8x128xf32> to vector<8x128xf32>
    %c3_208 = arith.constant 3 : index
    %c0_209 = arith.constant 0 : index
    %c0_210 = arith.constant 0 : index
    %321 = vector.load %arg1[%c3_208, %c0_209, %c0_210] : memref<30x8x128xf32, #tpu.memory_space<vmem>>, vector<1x8x128xf32>
    %322 = vector.shape_cast %321 : vector<1x8x128xf32> to vector<8x128xf32>
    %323 = arith.select %267, %320, %322 : vector<8x128xi1>, vector<8x128xf32>
    %324 = arith.select %3, %323, %301 : vector<8x128xi1>, vector<8x128xf32>
    %c8_211 = arith.constant 8 : index
    %c0_212 = arith.constant 0 : index
    %c0_213 = arith.constant 0 : index
    %325 = vector.load %arg2[%c8_211, %c0_212, %c0_213] : memref<30x8x128xf32, #tpu.memory_space<vmem>>, vector<1x8x128xf32>
    %326 = vector.shape_cast %325 : vector<1x8x128xf32> to vector<8x128xf32>
    %c3_214 = arith.constant 3 : index
    %c0_215 = arith.constant 0 : index
    %c0_216 = arith.constant 0 : index
    %327 = vector.load %arg2[%c3_214, %c0_215, %c0_216] : memref<30x8x128xf32, #tpu.memory_space<vmem>>, vector<1x8x128xf32>
    %328 = vector.shape_cast %327 : vector<1x8x128xf32> to vector<8x128xf32>
    %329 = arith.select %267, %326, %328 : vector<8x128xi1>, vector<8x128xf32>
    %330 = arith.select %3, %329, %301 : vector<8x128xi1>, vector<8x128xf32>
    %331 = math.sqrt %324 : vector<8x128xf32>
    %332 = math.sqrt %330 : vector<8x128xf32>
    %333 = arith.subf %331, %332 : vector<8x128xf32>
    %334 = arith.mulf %333, %333 : vector<8x128xf32>
    %335 = arith.addf %318, %334 : vector<8x128xf32>
    %336 = arith.select %5, %16, %301 : vector<8x128xi1>, vector<8x128xf32>
    %cst_217 = arith.constant 2.500000e-01 : f32
    %337 = vector.broadcast %cst_217 : f32 to vector<8x128xf32>
    %338 = arith.mulf %337, %336 : vector<8x128xf32>
    %cst_218 = arith.constant 5.000000e-01 : f32
    %339 = vector.broadcast %cst_218 : f32 to vector<8x128xf32>
    %340 = arith.mulf %339, %157 : vector<8x128xf32>
    %cst_219 = arith.constant 5.000000e-01 : f32
    %341 = vector.broadcast %cst_219 : f32 to vector<8x128xf32>
    %342 = arith.mulf %341, %275 : vector<8x128xf32>
    %343 = arith.addf %340, %342 : vector<8x128xf32>
    %cst_220 = arith.constant 2.500000e+00 : f32
    %344 = vector.broadcast %cst_220 : f32 to vector<8x128xf32>
    %345 = arith.mulf %344, %300 : vector<8x128xf32>
    %346 = arith.addf %343, %345 : vector<8x128xf32>
    %347 = arith.select %3, %346, %301 : vector<8x128xi1>, vector<8x128xf32>
    %348 = arith.addf %338, %347 : vector<8x128xf32>
    %cst_221 = arith.constant 2.500000e+00 : f32
    %349 = vector.broadcast %cst_221 : f32 to vector<8x128xf32>
    %350 = arith.mulf %349, %335 : vector<8x128xf32>
    %351 = arith.addf %348, %350 : vector<8x128xf32>
    %cst_222 = arith.constant 0.000000e+00 : f32
    %352 = vector.broadcast %cst_222 : f32 to vector<1x8x128xf32>
    %353 = vector.shape_cast %351 : vector<8x128xf32> to vector<1x8x128xf32>
    %cst_223 = arith.constant dense<0.000000e+00> : vector<1xf32>
    %354 = vector.multi_reduction <add>, %353, %cst_223 [1, 2] : vector<1x8x128xf32> to vector<1xf32>
    %355 = vector.shape_cast %354 : vector<1xf32> to vector<1x1x1xf32>
    %356 = vector.extract %355[0, 0, 0] : f32 from vector<1x1x1xf32>
    %357 = vector.broadcast %356 : f32 to vector<1x8x128xf32>
    %358 = arith.addf %352, %357 : vector<1x8x128xf32>
    %c0_224 = arith.constant 0 : index
    %c0_225 = arith.constant 0 : index
    %c0_226 = arith.constant 0 : index
    %359 = vector.load %arg3[%c0_224, %c0_225, %c0_226] : memref<1x8x128xf32, #tpu.memory_space<vmem>>, vector<1x8x128xf32>
    tpu.vector_store %arg3[%c0_224, %c0_225, %c0_226], %358 {strides = array<i32>} : memref<1x8x128xf32, #tpu.memory_space<vmem>>, vector<1x8x128xf32>,
    return
  }
  func.func @transform_0(%arg0: i32) -> (i32, i32, i32) {
    %c0_i32 = arith.constant 0 : i32
    %c0_i32_0 = arith.constant 0 : i32
    %c0_i32_1 = arith.constant 0 : i32
    return %c0_i32, %arg0, %c0_i32_0 : i32, i32, i32
  }
  func.func @transform_1(%arg0: i32) -> (i32, i32, i32) {
    %c0_i32 = arith.constant 0 : i32
    %c0_i32_0 = arith.constant 0 : i32
    %c0_i32_1 = arith.constant 0 : i32
    return %c0_i32, %arg0, %c0_i32_0 : i32, i32, i32
  }
  func.func @transform_2(%arg0: i32) -> (i32, i32, i32) {
    %c0_i32 = arith.constant 0 : i32
    %c0_i32_0 = arith.constant 0 : i32
    %c0_i32_1 = arith.constant 0 : i32
    return %arg0, %c0_i32, %c0_i32_0 : i32, i32, i32
  }
}

</mosaic_0001>

<bundles_post_ra>
// kernel: tpu_custom_call.1
= control target key start
LH: loop header
LB: loop body
LE: loop exit
PB: predicated region body
PF: predicated region fallthrough
CT: control target
= control target key end

     0   :  { %7 = vsyncpa [#allocation3], 0  ;;  %s619_s0 = inlined_call_operand.hbm [shape: f32[30,8,128], index: 0, kind: input, shape index: {}]   ;;  %s620_s1 = inlined_call_operand.hbm [shape: f32[30,8,128], index: 1, kind: input, shape index: {}]   ;;  %s621_s2 = inlined_call_operand.hbm [shape: f32[1,8,128], index: 2, kind: output, shape index: {}]  }
   0x1   :  { %8 = vsyncpa [#allocation6], 0 }
   0x2   :  { %9 = vsyncpa [#allocation4], 0  ;;  %s471_s9 = smov [#allocation2]   ;;  %s399_s13 = scalar_lea.hbm %s619_s0, 3840 }
   0x3   :  { %s15_s10 = sshll.u32 %s471_s9, 4  ;;  %p400_p0 = scmp.ne.s32.totalorder %s619_s0, %s399_s13  ;;  %s16_s10 = int_to_ptr.vmem [resolvable:$true] %s15_s10 }
   0x4   :  { %p403_p1 = scmp.lt.u32.totalorder %s399_s13, %s619_s0 }
   0x6   :  { %p405_p2 = pnand %p403_p1, %p400_p0 }
   0x8   :  { %408 = shalt.err (!%p405_p2)
}
   0x9   :  { %s409_s18 = scalar_lea.vmem %s16_s10, 3840  ;;  %p414_p4 = scmp.lt.s32.totalorder %s16_s10, %s16_s10 }
   0xa   :  { %p410_p3 = scmp.ne.s32.totalorder %s16_s10, %s409_s18  ;;  %p415_p5 = scmp.lt.s32.totalorder %s409_s18, %s409_s18 }
   0xc   :  { %p416_p6 = por %p415_p5, %p414_p4 }
   0xe   :  { %p417_p7 = pnand %p416_p6, %p410_p3 }
  0x10   :  { %420 = shalt.err (!%p417_p7)
}
  0x11   :  { %s472_s19 = smov 128   ;;  %s473_s20 = smov 8  }
  0x12   :  { %21 = dma.hbm_to_vmem [thread:$0]  %s619_s0, 3840, %s16_s10, [#allocation3], %s472_s19, %s472_s19, %s473_s20  }
  0x13   :  { %s474_s23 = smov [#allocation5]   ;;  %s421_s27 = scalar_lea.hbm %s620_s1, 3840 }
  0x14   :  { %s27_s24 = sshll.u32 %s474_s23, 4  ;;  %p422_p8 = scmp.ne.s32.totalorder %s620_s1, %s421_s27  ;;  %s28_s24 = int_to_ptr.vmem [resolvable:$true] %s27_s24 }
  0x15   :  { %p425_p9 = scmp.lt.u32.totalorder %s421_s27, %s620_s1 }
  0x17   :  { %p427_p10 = pnand %p425_p9, %p422_p8 }
  0x19   :  { %430 = shalt.err (!%p427_p10)
}
  0x1a   :  { %s431_s4 = scalar_lea.vmem %s28_s24, 3840  ;;  %p436_p12 = scmp.lt.s32.totalorder %s28_s24, %s28_s24 }
  0x1b   :  { %p432_p11 = scmp.ne.s32.totalorder %s28_s24, %s431_s4  ;;  %p437_p13 = scmp.lt.s32.totalorder %s431_s4, %s431_s4 }
  0x1d   :  { %p438_p0 = por %p437_p13, %p436_p12 }
  0x1f   :  { %p439_p1 = pnand %p438_p0, %p432_p11 }
  0x21   :  { %442 = shalt.err (!%p439_p1)
}
  0x22   :  { %33 = dma.hbm_to_vmem [thread:$0]  %s620_s1, 3840, %s28_s24, [#allocation6], %s472_s19, %s472_s19, %s473_s20  }
  0x23   :  { %465 = dma.done.wait [#allocation3], 3840  }
  0x24   :  { %466 = vsyncadd [#allocation3], 4294963456 }
  0x25   :  { %467 = dma.done.wait [#allocation6], 3840  }
  0x26   :  { %468 = vsyncadd [#allocation6], 4294963456  ;;  %v56_v0 = vld [vmem:[#allocation2 + $0x50] sm:$0xff]  ;;  %v58_v1 = vld [vmem:[#allocation5 + $0x50] sm:$0xff]  ;;  %s475_s1 = smov [#allocation7]  }
  0x27   :  { %v59_v2 = vsub.f32 %v56_v0, %v58_v1  ;;  %v63_v3 = vld [vmem:[#allocation2 + $0x58] sm:$0xff]  ;;  %v65_v4 = vld [vmem:[#allocation5 + $0x58] sm:$0xff]  ;;  %v70_v5 = vld [vmem:[#allocation2 + $0x60] sm:$0xff]  ;;  %s370_s6 = sshll.u32 %s475_s1, 4  ;;  %s371_s6 = int_to_ptr.vmem [resolvable:$true] %s370_s6 }
  0x28   :  { %v66_v6 = vsub.f32 %v63_v3, %v65_v4  ;;  %v72_v7 = vld [vmem:[#allocation5 + $0x60] sm:$0xff]  ;;  %v77_v8 = vld [vmem:[#allocation2 + $0x68] sm:$0xff]  ;;  %v79_v9 = vld [vmem:[#allocation5 + $0x68] sm:$0xff]  ;;  %s443_s8 = scalar_lea.vmem %s371_s6, 128  ;;  %p448_p3 = scmp.lt.s32.totalorder %s371_s6, %s371_s6 }
  0x29   :  { %v60_v10 = vmul.f32 %v59_v2, %v59_v2  ;;  %v73_v11 = vsub.f32 %v70_v5, %v72_v7  ;;  %v80_v12 = vsub.f32 %v77_v8, %v79_v9  ;;  %v84_v13 = vld [vmem:[#allocation2 + $0x70] sm:$0xff]  ;;  %v86_v14 = vld [vmem:[#allocation5 + $0x70] sm:$0xff]  ;;  %v91_v15 = vld [vmem:[#allocation2 + $0x78] sm:$0xff]  ;;  %p444_p2 = scmp.ne.s32.totalorder %s371_s6, %s443_s8  ;;  %p449_p4 = scmp.lt.s32.totalorder %s443_s8, %s443_s8 }
  0x2a   :  { %v67_v16 = vmul.f32 %v66_v6, %v66_v6  ;;  %v87_v17 = vsub.f32 %v84_v13, %v86_v14  ;;  %v93_v18 = vld [vmem:[#allocation5 + $0x78] sm:$0xff]  ;;  %v98_v20 = vld [vmem:[#allocation2 + $0x80] sm:$0xff]  ;;  %v100_v21 = vld [vmem:[#allocation5 + $0x80] sm:$0xff] }
  0x2b   :  { %v74_v19 = vmul.f32 %v73_v11, %v73_v11  ;;  %v81_v23 = vmul.f32 %v80_v12, %v80_v12  ;;  %v94_v24 = vsub.f32 %v91_v15, %v93_v18  ;;  %v105_v25 = vld [vmem:[#allocation2 + $0x88] sm:$0xff]  ;;  %v107_v26 = vld [vmem:[#allocation5 + $0x88] sm:$0xff]  ;;  %v112_v27 = vld [vmem:[#allocation2 + $0x90] sm:$0xff]  ;;  %v101_v33 = vsub.f32 %v98_v20, %v100_v21  ;;  %p450_p5 = por %p449_p4, %p448_p3 }
  0x2c   :  { %v68_v22 = vadd.f32 %v67_v16, %v60_v10  ;;  %v114_v28 = vld [vmem:[#allocation5 + $0x90] sm:$0xff]  ;;  %v119_v29 = vld [vmem:[#allocation2 + $0x98] sm:$0xff]  ;;  %v121_v30 = vld [vmem:[#allocation5 + $0x98] sm:$0xff]  ;;  %v88_v32 = vmul.f32 %v87_v17, %v87_v17  ;;  %v108_v36 = vsub.f32 %v105_v25, %v107_v26 }
  0x2d   :  { %v126_v34 = vld [vmem:[#allocation2 + $0xa0] sm:$0xff]  ;;  %v128_v35 = vld [vmem:[#allocation5 + $0xa0] sm:$0xff]  ;;  %v133_v37 = vld [vmem:[#allocation2 + $0xa8] sm:$0xff]  ;;  %v95_v40 = vmul.f32 %v94_v24, %v94_v24  ;;  %v115_v41 = vsub.f32 %v112_v27, %v114_v28  ;;  %v122_v42 = vsub.f32 %v119_v29, %v121_v30  ;;  %v102_v45 = vmul.f32 %v101_v33, %v101_v33  ;;  %p451_p6 = pnand %p450_p5, %p444_p2 }
  0x2e   :  { %v75_v31 = vadd.f32 %v74_v19, %v68_v22  ;;  %v135_v38 = vld [vmem:[#allocation5 + $0xa8] sm:$0xff]  ;;  %v129_v43 = vsub.f32 %v126_v34, %v128_v35  ;;  %v140_v47 = vld [vmem:[#allocation2 + $0xb0] sm:$0xff]  ;;  %v142_v48 = vld [vmem:[#allocation5 + $0xb0] sm:$0xff]  ;;  %v109_v49 = vmul.f32 %v108_v36, %v108_v36 }
  0x2f   :  { %v136_v46 = vsub.f32 %v133_v37, %v135_v38  ;;  %v515_v50 = vld [vmem:[#allocation5] sm:$0xff]  ;;  %v116_v52 = vmul.f32 %v115_v41, %v115_v41  ;;  %v123_v53 = vmul.f32 %v122_v42, %v122_v42  ;;  %v518_v55 = vld [vmem:[#allocation5 + $0x8] sm:$0xff]  ;;  %v520_v56 = vld [vmem:[#allocation5 + $0x10] sm:$0xff]  ;;  %v143_v59 = vsub.f32 %v140_v47, %v142_v48 }
  0x30   :  { %v82_v39 = vadd.f32 %v81_v23, %v75_v31  ;;  %v197_v54 = vmul.f32 0.14285715, %v515_v50  ;;  %v522_v57 = vld [vmem:[#allocation5 + $0x18] sm:$0xff]  ;;  %v130_v58 = vmul.f32 %v129_v43, %v129_v43  ;;  %v200_v60 = vmul.f32 0.14285715, %v518_v55  ;;  %v526_v62 = vld [vmem:[#allocation2] sm:$0xff] }
  0x31   :  { %v205_v61 = vmul.f32 0.5, %v520_v56  ;;  %v528_v63 = vld [vmem:[#allocation2 + $0x8] sm:$0xff]  ;;  %v530_v0 = vld [vmem:[#allocation2 + $0x10] sm:$0xff]  ;;  %v137_v2 = vmul.f32 %v136_v46, %v136_v46  ;;  %v208_v3 = vmul.f32 0.5, %v522_v57  ;;  %v215_v4 = vmul.f32 0.14285715, %v526_v62 }
  0x32   :  { %v89_v44 = vadd.f32 %v88_v32, %v82_v39  ;;  %v534_v5 = vld [vmem:[#allocation2 + $0x18] sm:$0xff]  ;;  %v536_v6 = vld [vmem:[#allocation2 + $0x28] sm:$0xff]  ;;  %v218_v9 = vmul.f32 0.14285715, %v528_v63  ;;  %v223_v10 = vmul.f32 0.5, %v530_v0  ;;  %v541_v15 = vld [vmem:[#allocation2 + $0x30] sm:$0xff]  ;;  %v144_v41 = vmul.f32 %v143_v59, %v143_v59 }
  0x33   :  { %v206_v7 = vsub.f32 %v197_v54, %v205_v61  ;;  %v207_v8 = vadd.f32 %v205_v61, %v197_v54  ;;  %v209_v12 = vsub.f32 %v200_v60, %v208_v3  ;;  %v210_v13 = vadd.f32 %v208_v3, %v200_v60  ;;  %v544_v24 = vld [vmem:[#allocation2 + $0x38] sm:$0xff]  ;;  %v546_v25 = vld [vmem:[#allocation2 + $0x40] sm:$0xff]  ;;  %v149_v27 = vld [vmem:[#allocation5 + $0xb8] sm:$0xff] }
  0x34   :  { %v96_v51 = vadd.f32 %v95_v40, %v89_v44  ;;  %v226_v14 = vmul.f32 0.5, %v534_v5  ;;  %v224_v17 = vsub.f32 %v215_v4, %v223_v10  ;;  %v225_v18 = vadd.f32 %v223_v10, %v215_v4  ;;  %v147_v26 = vld [vmem:[#allocation2 + $0xb8] sm:$0xff]  ;;  %v156_v54 = vld [vmem:[#allocation5 + $0xc0] sm:$0xff] }
  0x35   :  { %v211_v16 = vsub.f32 %v207_v8, %v206_v7  ;;  %v247_v19 = vmul.f32 0.14285715, %v536_v6  ;;  %v212_v21 = vsub.f32 %v210_v13, %v209_v12  ;;  %v250_v31 = vmul.f32 0.14285715, %v541_v15 }
  0x36   :  { %v103_v1 = vadd.f32 %v102_v45, %v96_v51  ;;  %v227_v22 = vsub.f32 %v218_v9, %v226_v14  ;;  %v228_v23 = vadd.f32 %v226_v14, %v218_v9  ;;  %v229_v28 = vmin.f32 %v225_v18, %v207_v8 }
  0x37   :  { %v230_v29 = vmax.f32 %v224_v17, %v206_v7  ;;  %v238_v30 = vsub.f32 %v225_v18, %v224_v17  ;;  %v213_v33 = vmul.f32 %v212_v21, %v211_v16  ;;  %v255_v38 = vmul.f32 0.5, %v544_v24  ;;  %v163_v21 = vld [vmem:[#allocation5 + $0xc8] sm:$0xff] }
  0x38   :  { %v110_v11 = vadd.f32 %v109_v49, %v103_v1  ;;  %v233_v34 = vmin.f32 %v228_v23, %v210_v13  ;;  %v234_v35 = vmax.f32 %v227_v22, %v209_v12  ;;  %v239_v37 = vsub.f32 %v228_v23, %v227_v22 }
  0x39   :  { %v231_v36 = vsub.f32 %v229_v28, %v230_v29  ;;  %v258_v39 = vmul.f32 0.5, %v546_v25  ;;  %v150_v42 = vsub.f32 %v147_v26, %v149_v27  ;;  %v256_v46 = vsub.f32 %v247_v19, %v255_v38 }
  0x3a   :  { %v117_v20 = vadd.f32 %v116_v52, %v110_v11  ;;  %v235_v43 = vsub.f32 %v233_v34, %v234_v35  ;;  %v240_v45 = vmul.f32 %v239_v37, %v238_v30  ;;  %v257_v47 = vadd.f32 %v255_v38, %v247_v19  ;;  %v177_v34 = vld [vmem:[#allocation5 + $0xd8] sm:$0xff] }
  0x3b   :  { %v232_v44 = vmax.f32 %v231_v36, 0.0  ;;  %v259_v51 = vsub.f32 %v250_v31, %v258_v39  ;;  %v260_v52 = vadd.f32 %v258_v39, %v250_v31  ;;  %v262_v1 = vmax.f32 %v256_v46, %v206_v7  ;;  %v182_v39 = vld [vmem:[#allocation2 + $0xe0] sm:$0xff] }
  0x3c   :  { %v124_v32 = vadd.f32 %v123_v53, %v117_v20  ;;  %v236_v49 = vmax.f32 %v235_v43, 0.0  ;;  %v154_v53 = vld [vmem:[#allocation2 + $0xc0] sm:$0xff]  ;;  %v241_v60 = vadd.f32 %v240_v45, %v213_v33  ;;  %v261_v61 = vmin.f32 %v257_v47, %v207_v8  ;;  %v161_v20 = vld [vmem:[#allocation2 + $0xc8] sm:$0xff] }
  0x3d   :  { %v270_v3 = vsub.f32 %v257_v47, %v256_v46  ;;  %v265_v9 = vmin.f32 %v260_v52, %v210_v13  ;;  %v271_v10 = vsub.f32 %v260_v52, %v259_v51  ;;  %v157_v11 = vsub.f32 %v154_v53, %v156_v54  ;;  %v168_v13 = vld [vmem:[#allocation2 + $0xd0] sm:$0xff]  ;;  %v189_v43 = vld [vmem:[#allocation2 + $0xe8] sm:$0xff]  ;;  %v284_v53 = vld [vmem:[#allocation5 + $0x28] sm:$0xff] }
  0x3e   :  { %v131_v40 = vadd.f32 %v130_v58, %v124_v32  ;;  %v237_v4 = vmul.f32 %v236_v49, %v232_v44  ;;  %v266_v58 = vmax.f32 %v259_v51, %v209_v12  ;;  %v263_v59 = vsub.f32 %v261_v61, %v262_v1  ;;  %v170_v12 = vld [vmem:[#allocation5 + $0xd0] sm:$0xff]  ;;  %v175_v32 = vld [vmem:[#allocation2 + $0xd8] sm:$0xff]  ;;  %v551_v47 = vld [vmem:[#allocation5 + $0x20] sm:$0xff] }
  0x3f   :  { %v151_v18 = vmul.f32 %v150_v42, %v150_v42  ;;  %v272_v19 = vmul.f32 %v271_v10, %v270_v3  ;;  %v158_v26 = vmul.f32 %v157_v11, %v157_v11  ;;  %v164_v27 = vsub.f32 %v161_v20, %v163_v21  ;;  %v191_v44 = vld [vmem:[#allocation5 + $0xe8] sm:$0xff]  ;;  %v49_v49 = vld [vmem:[#allocation2 + $0x48] sm:$0xff]  ;;  %v290_v54 = vld [vmem:[#allocation5 + $0x30] sm:$0xff] }
  0x40   :  { %v138_v48 = vadd.f32 %v137_v2, %v131_v40  ;;  %v242_v14 = vsub.f32 %v241_v60, %v237_v4  ;;  %v267_v16 = vsub.f32 %v265_v9, %v266_v58  ;;  %v264_v2 = vmax.f32 %v263_v59, 0.0  ;;  %v298_v3 = vld [vmem:[#allocation5 + $0x38] sm:$0xff] }
  0x41   :  { %v273_v23 = vadd.f32 %v272_v19, %v213_v33  ;;  %v165_v30 = vmul.f32 %v164_v27, %v164_v27  ;;  %v171_v31 = vsub.f32 %v168_v13, %v170_v12  ;;  %v178_v37 = vsub.f32 %v175_v32, %v177_v34  ;;  %v184_v33 = vld [vmem:[#allocation5 + $0xe0] sm:$0xff] }
  0x42   :  { %v145_v17 = vadd.f32 %v144_v41, %v138_v48  ;;  %v268_v22 = vmax.f32 %v267_v16, 0.0  ;;  %387 = vrcp.f32 %v242_v14  ;;  %v185_v42 = vsub.f32 %v182_v39, %v184_v33  ;;  %v45_v48 = vld [vmem:[#allocation2 + $0x20] sm:$0xff] }
  0x43   :  { %v172_v36 = vmul.f32 %v171_v31, %v171_v31  ;;  %v179_v41 = vmul.f32 %v178_v37, %v178_v37  ;;  %v192_v52 = vsub.f32 %v189_v43, %v191_v44  ;;  %vm42_vm1 = vcmp.gt.f32.partialorder %v551_v47, 0.0 }
  0x44   :  { %v269_v8 = vmul.f32 %v268_v22, %v264_v2  ;;  %v152_v7 = vadd.f32 %v151_v18, %v145_v17  ;;  %v186_v61 = vmul.f32 %v185_v42, %v185_v42  ;;  %vm43_vm2 = vcmp.eq.f32.partialorder %v551_v47, 0.0 }
  0x45   :  { %v193_v14 = vmul.f32 %v192_v52, %v192_v52 }
  0x46   :  { %v274_v28 = vsub.f32 %v273_v23, %v269_v8  ;;  %v159_v29 = vadd.f32 %v158_v26, %v152_v7 }
  0x48   :  { %389 = vrcp.f32 %v274_v28  ;;  %v166_v35 = vadd.f32 %v165_v30, %v159_v29 }
  0x4a   :  { %v173_v40 = vadd.f32 %v172_v36, %v166_v35 }
  0x4c   :  { %v388_v38 = vpop.eup %387  ;;  %v180_v60 = vadd.f32 %v179_v41, %v173_v40 }
  0x4d   :  { %v244_v45 = vmul.f32 %v388_v38, %v237_v4 }
  0x52   :  { %v390_v46 = vpop.eup %389 }
  0x53   :  { %v276_v51 = vmul.f32 %v390_v46, %v269_v8 }
  0x55   :  { %vm553_vm0 = vcmp.gt.f32.partialorder %v276_v51, %v244_v45 }
  0x56   :  { %v278_v4 = vsel %vm553_vm0, %v276_v51, %v244_v45  ;;  %v279_v9 = vsel %vm553_vm0, %v49_v49, %v45_v48  ;;  %v282_v58 = vsel %vm553_vm0, %v536_v6, %v526_v62  ;;  %v285_v59 = vsel %vm553_vm0, %v284_v53, %v515_v50  ;;  %v51_v50 = vld [vmem:[#allocation5 + $0x48] sm:$0xff] }
  0x57   :  { %v288_v10 = vsel %vm553_vm0, %v541_v15, %v528_v63  ;;  %v291_v11 = vsel %vm553_vm0, %v290_v54, %v518_v55  ;;  %v295_v16 = vsel %vm553_vm0, %v544_v24, %v530_v0  ;;  %v299_v62 = vsel %vm553_vm0, %v298_v3, %v520_v56  ;;  %v321_v15 = vld [vmem:[#allocation5 + $0x40] sm:$0xff] }
  0x58   :  { %v187_v6 = vadd.f32 %v186_v61, %v180_v60  ;;  %v296_v17 = vsel %vm42_vm1, %v295_v16, 0.0  ;;  %v300_v63 = vsel %vm42_vm1, %v299_v62, 0.0  ;;  %v318_v55 = vsel %vm553_vm0, %v546_v25, %v534_v5 }
  0x59   :  { %v280_v18 = vsub.f32 %v279_v9, %v278_v4  ;;  %v286_v0 = vsub.f32 %v282_v58, %v285_v59  ;;  %v292_v24 = vsub.f32 %v288_v10, %v291_v11  ;;  %391 = vrsqrt.f32 %v296_v17 }
  0x5a   :  { %393 = vrsqrt.f32 %v300_v63  ;;  %v46_v56 = vsub.f32 %v45_v48, %v551_v47  ;;  %v52_v2 = vsub.f32 %v49_v49, %v51_v50  ;;  %v319_v19 = vsel %vm42_vm1, %v318_v55, 0.0 }
  0x5b   :  { %v322_v20 = vsel %vm553_vm0, %v321_v15, %v522_v57  ;;  %v194_v21 = vadd.f32 %v193_v14, %v187_v6  ;;  %395 = vrsqrt.f32 %v319_v19  ;;  %v281_v25 = vmul.f32 %v280_v18, %v280_v18 }
  0x5c   :  { %v323_v5 = vsel %vm42_vm1, %v322_v20, 0.0  ;;  %v287_v22 = vmul.f32 %v286_v0, %v286_v0  ;;  %v293_v23 = vmul.f32 %v292_v24, %v292_v24  ;;  %v47_v8 = vmul.f32 %v46_v56, %v46_v56 }
  0x5d   :  { %397 = vrsqrt.f32 %v323_v5  ;;  %v53_v7 = vmul.f32 %v52_v2, %v52_v2  ;;  %v343_v27 = vmul.f32 0.5, %v194_v21  ;;  %v344_v13 = vmul.f32 0.5, %v281_v25 }
  0x5e   :  { %v294_v26 = vadd.f32 %v293_v23, %v287_v22  ;;  %vm303_vm3 = vcmp.eq.f32.partialorder %v296_v17, inf  ;;  %vm305_vm4 = vcmp.eq.f32.partialorder %v296_v17, 0.0  ;;  %v306_v57 = vand.u32 2147483648, %v296_v17 }
  0x5f   :  { %v54_v28 = vadd.f32 %v53_v7, %v47_v8  ;;  %vm310_vm5 = vcmp.eq.f32.partialorder %v300_v63, inf  ;;  %vm312_vm6 = vcmp.eq.f32.partialorder %v300_v63, 0.0  ;;  %v313_v31 = vand.u32 2147483648, %v300_v63 }
  0x60   :  { %vm326_vm7 = vcmp.eq.f32.partialorder %v319_v19, inf  ;;  %v345_v34 = vadd.f32 %v344_v13, %v343_v27  ;;  %v346_v35 = vmul.f32 2.5, %v294_v26  ;;  %vm328_vm8 = vcmp.eq.f32.partialorder %v319_v19, 0.0 }
  0x61   :  { %v329_v38 = vand.u32 2147483648, %v319_v19  ;;  %vm333_vm9 = vcmp.eq.f32.partialorder %v323_v5, inf  ;;  %v336_v42 = vand.u32 2147483648, %v323_v5  ;;  %vm335_vm10 = vcmp.eq.f32.partialorder %v323_v5, 0.0 }
  0x62   :  { %v341_v48 = vsel %vm43_vm2, %v54_v28, 0.0  ;;  %v347_v49 = vadd.f32 %v346_v35, %v345_v34 }
  0x63   :  { %v392_v12 = vpop.eup %391  ;;  %v342_v61 = vmul.f32 0.25, %v341_v48 }
  0x64   :  { %v394_v29 = vpop.eup %393  ;;  %v302_v30 = vmul.f32 %v392_v12, %v296_v17  ;;  %v348_v1 = vsel %vm42_vm1, %v347_v49, 0.0 }
  0x65   :  { %v309_v32 = vmul.f32 %v394_v29, %v300_v63  ;;  %v396_v36 = vpop.eup %395  ;;  %v349_v9 = vadd.f32 %v348_v1, %v342_v61 }
  0x66   :  { %v304_v37 = vsel %vm303_vm3, %v296_v17, %v302_v30  ;;  %v325_v41 = vmul.f32 %v396_v36, %v319_v19 }
  0x67   :  { %v398_v39 = vpop.eup %397  ;;  %v307_v33 = vsel %vm305_vm4, %v306_v57, %v304_v37  ;;  %v311_v40 = vsel %vm310_vm5, %v300_v63, %v309_v32 }
  0x68   :  { %v314_v43 = vsel %vm312_vm6, %v313_v31, %v311_v40  ;;  %v332_v44 = vmul.f32 %v398_v39, %v323_v5  ;;  %v327_v46 = vsel %vm326_vm7, %v319_v19, %v325_v41 }
  0x69   :  { %v315_v45 = vsub.f32 %v307_v33, %v314_v43  ;;  %v330_v51 = vsel %vm328_vm8, %v329_v38, %v327_v46 }
  0x6a   :  { %v334_v52 = vsel %vm333_vm9, %v323_v5, %v332_v44 }
  0x6b   :  { %v337_v53 = vsel %vm335_vm10, %v336_v42, %v334_v52  ;;  %v316_v54 = vmul.f32 %v315_v45, %v315_v45 }
  0x6c   :  { %v338_v60 = vsub.f32 %v330_v51, %v337_v53 }
  0x6e   :  { %v339_v3 = vmul.f32 %v338_v60, %v338_v60 }
  0x70   :  { %v340_v4 = vadd.f32 %v339_v3, %v316_v54 }
  0x72   :  { %v350_v58 = vmul.f32 2.5, %v340_v4 }
  0x74   :  { %v351_v59 = vadd.f32 %v350_v58, %v349_v9 }
  0x76   :  { %352 = vadd.xlane.f32.xlu0 %v351_v59 }
 0x103   :  { %v353_v10 = vpop.xlane.xlu0 %352 }
 0x104   :  { %v354_v11 = vrot.slane %v353_v10, 4 }
 0x106   :  { %v355_v14 = vadd.f32 %v354_v11, %v353_v10 }
 0x108   :  { %v356_v16 = vrot.slane %v355_v14, 2 }
 0x10a   :  { %v357_v62 = vadd.f32 %v356_v16, %v355_v14 }
 0x10c   :  { %v358_v50 = vrot.slane %v357_v62, 1 }
 0x10e   :  { %v359_v6 = vadd.f32 %v358_v50, %v357_v62 }
 0x110   :  { %380 = vpush %v359_v6 }
 0x141   :  { %s381_s7 = spop %380 }
 0x142   :  { %v361_v47 = vstv %s381_s7 }
 0x143   :  { %363 = vst [vmem:[#allocation7] sm:$0xff] %v361_v47 }
 0x144   :  { %454 = shalt.err (!%p451_p6)
}
 0x145   :  { %s455_s11 = scalar_lea.hbm %s621_s2, 128 }
 0x146   :  { %p456_p7 = scmp.ne.s32.totalorder %s621_s2, %s455_s11  ;;  %p459_p8 = scmp.lt.u32.totalorder %s455_s11, %s621_s2 }
 0x148   :  { %p461_p9 = pnand %p459_p8, %p456_p7 }
 0x14a   :  { %464 = shalt.err (!%p461_p9)
}
 0x14b   :  { %373 = dma.vmem_to_hbm [thread:$0]  %s371_s6, 128, %s621_s2, [#allocation4]  }
 0x14c   :  { %469 = dma.done.wait [#allocation4], 128  }
 0x14d   :  { %470 = vsyncadd [#allocation4], 4294967168 }
 0x14e   :  { %377 = vsyncpa [#allocation3], 1 }
 0x14f   :  { %378 = vsyncpa [#allocation6], 1 }
 0x150   :  { %379 = vsyncpa [#allocation4], 1 }

</bundles_post_ra>
